<compile_context>
chip_gen: v5e
topology: v5e:2x2
jax: 0.10.0
libtpu: 0.0.40
codegen_flags: <defaults>
</compile_context>

<pallas_src>
import functools

import jax
import jax.numpy as jnp
import numpy as np
from jax import lax
from jax.experimental import pallas as pl
from jax.experimental.pallas import tpu as pltpu


# ---------------------------------------------------------------------------
# Upsample-into-weights folding.
# ---------------------------------------------------------------------------
def _fold_pairs(sh):
    """Per output-row phase psi, the distinct padded-original row offsets i."""
    return tuple(tuple(sorted({1 + (psi + kh - 1) // sh for kh in range(3)}))
                 for psi in range(sh))


def _fold_weights(w_hwio, sh, sw, pairs):
    """(3,3,Cin,Cout) -> (n_nz, 3*Cin, sw*Cout) with H and W upsample folded.

    Output pixel (sh*yb+psi, sw*xb+phi): conv tap (kh, kw) reads the nearest-
    upsampled, zero-padded pixel, which maps to *padded original* (yb+i, xb+j)
    with i = 1+(psi+kh-1)//sh and j = 1+(phi+kw-1)//sw.  Weights are summed
    per (psi, i) into (j*Cin, phi*Cout) blocks; all-zero (psi, i) blocks
    (duplicated upsampled rows) are dropped -> only n_nz = sum(|I(psi)|) blocks.
    """
    _, _, cin, cout = w_hwio.shape
    sel_h = np.zeros((3, 3, sh), np.float32)
    for kh in range(3):
        for psi in range(sh):
            sel_h[kh, 1 + (psi + kh - 1) // sh, psi] = 1.0
    sel_w = np.zeros((3, 3, sw), np.float32)
    for kw in range(3):
        for phi in range(sw):
            sel_w[kw, 1 + (phi + kw - 1) // sw, phi] = 1.0
    sel_h = jnp.asarray(sel_h, w_hwio.dtype)
    sel_w = jnp.asarray(sel_w, w_hwio.dtype)
    # (psi, i, j, cin, phi, cout)
    wfull = jnp.einsum("kip,ljq,klco->pijcqo", sel_h, sel_w, w_hwio)
    blocks = [wfull[psi, i].reshape(3 * cin, sw * cout)
              for psi in range(sh) for i in pairs[psi]]
    return jnp.stack(blocks, axis=0)                      # (n_nz, 3*Cin, sw*Cout)


# ---------------------------------------------------------------------------
# Kernel: fused nearest-upsample + 3x3 "same" conv for one (batch, row tile).
# ---------------------------------------------------------------------------
def _upsample_conv_kernel(x_ref, w_ref, b_ref, o_ref, *, th_in, sh, sw, pairs):
    """
    x_ref : (1, H+2, W+2, Cin)         zero-padded ORIGINAL-resolution image,
                                       VMEM-resident across the row-tile axis
    w_ref : (n_nz, 3*Cin, sw*Cout)     upsample-folded weights
    b_ref : (1, sw*Cout)               phase-tiled bias (f32)
    o_ref : (1, th_in, sh, W, sw*Cout) output tile; row-major bytes == NHWC
    """
    r = pl.program_id(1)
    _, _, wp, cin = x_ref.shape
    w = wp - 2
    cout_sw = o_ref.shape[-1]

    # Padded-original rows feeding this tile (includes the 1-row conv halo).
    row0 = pl.multiple_of(r * th_in, th_in)
    xs = x_ref[0, pl.ds(row0, th_in + 2), :, :]           # (th_in+2, W+2, Cin)

    # Lane-axis concat of the 3 column taps (hoisted out of all matmuls):
    # every matmul below has K = 3*Cin and a free leading-axis patch slice.
    cols = jnp.concatenate([xs[:, j:j + w, :] for j in range(3)], axis=-1)

    # Bias-initialised vreg accumulator (no VMEM scratch round-trips).
    bias_row = jnp.broadcast_to(b_ref[0].astype(jnp.float32),
                                (th_in * w, cout_sw))

    t = 0
    for psi in range(sh):                                  # static unroll
        acc = bias_row
        for i in pairs[psi]:                               # <= 2 row taps/phase
            patch = cols[i:i + th_in].reshape(th_in * w, 3 * cin)
            acc = acc + jnp.dot(patch, w_ref[t],
                                preferred_element_type=jnp.float32)
            t += 1
        o_ref[0, :, psi, :, :] = acc.reshape(th_in, w, cout_sw).astype(o_ref.dtype)


# ---------------------------------------------------------------------------
# VMEM budgeting helpers (generation aware).
# ---------------------------------------------------------------------------
def _round_up(x, m):
    return -(-x // m) * m


def _padded_bytes(shape, itemsize):
    """VMEM footprint of a buffer with (8, 128) minor-tile padding."""
    *outer, s, l = shape
    n_outer = 1
    for d in outer:
        n_outer *= d
    return n_outer * _round_up(s, 8) * _round_up(l, 128) * itemsize


def _vmem_capacity_bytes():
    try:
        info = pltpu.get_tpu_info()
        for attr in ("vmem_capacity_bytes", "vmem_size_bytes"):
            cap = getattr(info, attr, None)
            if cap:
                return int(cap)
    except Exception:
        pass
    return 64 << 20          # conservative default: v7x has 64 MiB per TC


def _tile_vmem_bytes(th_in, w, cin, cout, sh, sw, in_it, out_it):
    cols = _padded_bytes((th_in + 2, w, 3 * cin), in_it)
    xs = _padded_bytes((th_in + 2, w + 2, cin), in_it)
    patch = _padded_bytes((th_in * w, 3 * cin), in_it)
    acc = _padded_bytes((th_in * w, sw * cout), 4)
    out_blk = 2 * _padded_bytes((1, th_in, sh, w, sw * cout), out_it)
    return 2 * cols + xs + patch + acc + out_blk           # 2x cols = temp slack


def _choose_row_tile(h, w, cin, cout, sh, sw, in_it, out_it, budget):
    for th_in in range(h, 0, -1):
        if h % th_in:
            continue
        if _tile_vmem_bytes(th_in, w, cin, cout, sh, sw, in_it, out_it) <= budget:
            return th_in
    # Nothing fits the budget: fall back to the smallest tile and let the
    # capacity-clamped vmem limit absorb it (explicit, no silent over-budget).
    # TODO(synk): add a Cin-split ("arbitrary") grid axis for very large channel
    # counts whose resident image + folded weights exceed v7x's 64 MiB VMEM.
    return 1


def _grid_invariant_spec(block_shape, index_map):
    """BlockSpec for a grid-invariant operand, single-buffered when supported."""
    try:
        return pl.BlockSpec(block_shape, index_map, pipeline_mode=pl.Buffered(1))
    except Exception:        # fall back to default double buffering
        return pl.BlockSpec(block_shape, index_map)


# ---------------------------------------------------------------------------
# Wrapper.
# ---------------------------------------------------------------------------
def upsample_conv3x3_nhwc(x_nhwc, w_hwio, bias, scale, *, row_tile=None,
                          compute_dtype=None):
    """Fused nearest-upsample (scale) + 3x3 'same' conv.  NHWC in / NHWC out."""
    n, h, w, cin = x_nhwc.shape
    sh, sw = scale
    cout = w_hwio.shape[-1]
    hu, wu = h * sh, w * sw
    out_dtype = x_nhwc.dtype

    pairs = _fold_pairs(sh)
    n_nz = sum(len(p) for p in pairs)

    # 1-pixel zero pad at ORIGINAL resolution; the kernel maps the upsampled
    # conv halo onto these rows/cols (no upsampled tensor ever hits HBM/VMEM).
    x_pad = jnp.pad(x_nhwc, ((0, 0), (1, 1), (1, 1), (0, 0)))
    wf = _fold_weights(w_hwio, sh, sw, pairs)              # (n_nz, 3*Cin, sw*Cout)
    bias_t = jnp.tile(bias.astype(jnp.float32), sw).reshape(1, sw * cout)
    if compute_dtype is not None:                          # e.g. bf16 MXU inputs
        x_pad = x_pad.astype(compute_dtype)
        wf = wf.astype(compute_dtype)

    in_it = jnp.dtype(x_pad.dtype).itemsize
    out_it = jnp.dtype(out_dtype).itemsize

    # Generation-aware VMEM budgeting (v5e/v6e: 128 MiB, v7x: 64 MiB per TC).
    cap = _vmem_capacity_bytes()
    resident = (2 * _padded_bytes((1, h + 2, w + 2, cin), in_it)      # image x2
                + _padded_bytes((n_nz, 3 * cin, sw * cout), in_it)    # weights x1
                + _padded_bytes((1, sw * cout), 4))                   # bias
    target = min(cap - (8 << 20), (cap * 3) // 4)
    budget = target - resident - (2 << 20)

    th_in = row_tile if row_tile is not None else _choose_row_tile(
        h, w, cin, cout, sh, sw, in_it, out_it, budget)
    assert h % th_in == 0, (h, th_in)
    n_tiles = h // th_in

    need = resident + _tile_vmem_bytes(th_in, w, cin, cout, sh, sw, in_it, out_it)
    # Always set the scoped limit (v5e's default is only 16 MiB) and keep it
    # strictly below physical VMEM (64 MiB/TC on v7x).
    vmem_limit = int(min(max(need + need // 4 + (2 << 20), 32 << 20),
                         cap - (4 << 20)))

    # Megacore: shard the batch when possible so each core keeps only its own
    # image resident; otherwise shard the row tiles.
    dims_sem = ("parallel", "arbitrary") if n >= 2 else ("arbitrary", "parallel")

    cost = pl.CostEstimate(
        flops=int(2 * n * n_nz * h * w * 3 * cin * sw * cout),
        transcendentals=0,
        bytes_accessed=int(x_pad.size * in_it + wf.size * in_it
                           + bias_t.size * 4 + n * hu * wu * cout * out_it),
    )

    kernel = functools.partial(_upsample_conv_kernel,
                               th_in=th_in, sh=sh, sw=sw, pairs=pairs)

    grid_spec = pltpu.PrefetchScalarGridSpec(
        num_scalar_prefetch=0,
        grid=(n, n_tiles),
        in_specs=[
            # Whole padded original-resolution image stays VMEM-resident across
            # the row-tile axis; re-DMA'd only when the batch index changes.
            pl.BlockSpec((1, h + 2, w + 2, cin), lambda b, r: (b, 0, 0, 0)),
            # Grid-invariant operands: single-buffered to halve their VMEM.
            _grid_invariant_spec((n_nz, 3 * cin, sw * cout),
                                 lambda b, r: (0, 0, 0)),
            _grid_invariant_spec((1, sw * cout), lambda b, r: (0, 0)),
        ],
        out_specs=pl.BlockSpec((1, th_in, sh, w, sw * cout),
                               lambda b, r: (b, r, 0, 0, 0)),
    )

    y = pl.pallas_call(
        kernel,
        out_shape=jax.ShapeDtypeStruct((n, h, sh, w, sw * cout), out_dtype),
        grid_spec=grid_spec,
        compiler_params=pltpu.CompilerParams(
            dimension_semantics=dims_sem, vmem_limit_bytes=vmem_limit),
        cost_estimate=cost,
    )(x_pad, wf, bias_t)

    # (N, H, sh, W, sw*Cout) row-major bytes == NHWC of (N, Hu, Wu, Cout).
    return y.reshape(n, hu, wu, cout)


# ---------------------------------------------------------------------------
# Module wrapper (PyTorch `Upsample` parity).
# ---------------------------------------------------------------------------
class Upsample:
    """Pallas port of the PyTorch Upsample(channels, use_conv, dims, ...) block.

    __call__ accepts / returns NCHW to match the PyTorch module.  Inside an
    NHWC model prefer `forward_nhwc`, which skips the two full-tensor layout
    transposes around the kernel (the post-kernel one reads+writes the whole
    upsampled tensor in HBM).
    """

    def __init__(self, channels, use_conv, dims=2, out_channels=None, scale=2,
                 *, key=None, dtype=jnp.float32):
        if dims != 2:
            # TODO(synk): only dims=2 (Conv2d) is ported; dims=1/3 not implemented.
            raise NotImplementedError("only dims=2 is implemented")
        self.channels = channels
        self.out_channels = out_channels or channels
        self.use_conv = use_conv
        self.dims = dims
        self.scale = tuple([scale] * dims) if isinstance(scale, int) else tuple(scale)
        if use_conv:
            if key is None:
                key = jax.random.PRNGKey(0)
            kw_key, kb_key = jax.random.split(key)
            # Matches nn.Conv2d default init: U(-1/sqrt(fan_in), +1/sqrt(fan_in)).
            fan_in = channels * 3 * 3
            bound = 1.0 / (fan_in ** 0.5)
            self.weight_hwio = jax.random.uniform(
                kw_key, (3, 3, channels, self.out_channels), dtype,
                minval=-bound, maxval=bound)
            self.bias = jax.random.uniform(
                kb_key, (self.out_channels,), dtype, minval=-bound, maxval=bound)

    def forward_nhwc(self, x_nhwc, *, row_tile=None, compute_dtype=None):
        assert x_nhwc.shape[-1] == self.channels
        sh, sw = self.scale
        if not self.use_conv:
            # Pure nearest upsample: memory-bound repeat, no conv to fuse into.
            return jnp.repeat(jnp.repeat(x_nhwc, sh, axis=1), sw, axis=2)
        return upsample_conv3x3_nhwc(
            x_nhwc, self.weight_hwio, self.bias, self.scale,
            row_tile=row_tile, compute_dtype=compute_dtype)

    def __call__(self, x_nchw, *, row_tile=None, compute_dtype=None):
        assert x_nchw.shape[1] == self.channels
        sh, sw = self.scale
        if not self.use_conv:
            return jnp.repeat(jnp.repeat(x_nchw, sh, axis=2), sw, axis=3)
        x_nhwc = jnp.transpose(x_nchw, (0, 2, 3, 1))
        y_nhwc = self.forward_nhwc(x_nhwc, row_tile=row_tile,
                                   compute_dtype=compute_dtype)
        # Back to NCHW to match the PyTorch module's contract.
        return jnp.transpose(y_nhwc, (0, 3, 1, 2))


# ---------------------------------------------------------------------------
# Pure-JAX reference and self-test.
# ---------------------------------------------------------------------------
def _reference(x_nchw, scale, w_hwio, bias):
    sh, sw = scale
    x = jnp.repeat(jnp.repeat(x_nchw, sh, axis=2), sw, axis=3)
    w_oihw = jnp.transpose(w_hwio, (3, 2, 0, 1))
    y = lax.conv_general_dilated(
        x, w_oihw, window_strides=(1, 1), padding=((1, 1), (1, 1)),
        dimension_numbers=("NCHW", "OIHW", "NCHW"))
    return y + bias[None, :, None, None]


if __name__ == "__main__":
    key = jax.random.PRNGKey(0)
    k_x1, k_p1, k_x2, k_p2 = jax.random.split(key, 4)

    # Case 1: scale=2, explicit row tiling (multi-tile + halo path).
    n, c, h, w, c_out = 2, 4, 16, 16, 8
    x1 = jax.random.normal(k_x1, (n, c, h, w), dtype=jnp.float32)
    mod1 = Upsample(c, True, dims=2, out_channels=c_out, scale=2, key=k_p1)
    y1 = jax.block_until_ready(mod1(x1, row_tile=4))
    assert y1.shape == (n, c_out, 2 * h, 2 * w), y1.shape
    ref1 = _reference(x1, mod1.scale, mod1.weight_hwio, mod1.bias)
    err1 = float(jnp.max(jnp.abs(y1 - ref1)))
    assert jnp.allclose(y1, ref1, atol=1e-4, rtol=1e-4), err1

    # Case 2: anisotropic scale (2, 3), auto row tile (single-tile path).
    x2 = jax.random.normal(k_x2, (1, 6, 8, 8), dtype=jnp.float32)
    mod2 = Upsample(6, True, dims=2, scale=(2, 3), key=k_p2)
    y2 = jax.block_until_ready(mod2(x2))
    assert y2.shape == (1, 6, 16, 24), y2.shape
    ref2 = _reference(x2, mod2.scale, mod2.weight_hwio, mod2.bias)
    err2 = float(jnp.max(jnp.abs(y2 - ref2)))
    assert jnp.allclose(y2, ref2, atol=1e-4, rtol=1e-4), err2

    # Case 3: bf16 MXU inputs (f32 accumulation) -- looser tolerance.
    y1b = jax.block_until_ready(mod1(x1, compute_dtype=jnp.bfloat16))
    errb = float(jnp.max(jnp.abs(y1b - ref1)))
    assert jnp.allclose(y1b, ref1, atol=5e-2, rtol=5e-2), errb

    # Case 4: no conv (pure nearest upsample).
    mod3 = Upsample(c, False, dims=2, scale=2)
    y3 = jax.block_until_ready(mod3(x1))
    assert y3.shape == (n, c, 2 * h, 2 * w)
    assert jnp.allclose(y3, jnp.repeat(jnp.repeat(x1, 2, axis=2), 2, axis=3))

    print("KERNEL_OK")
</pallas_src>

<mosaic_0001>
module attributes {stable_mosaic.version = 11 : i64} {
  func.func @_upsample_conv_kernel(%arg0: i32, %arg1: i32, %arg2: memref<1x18x18x4xf32, #tpu.memory_space<vmem>>, %arg3: memref<4x12x16xf32, #tpu.memory_space<vmem>>, %arg4: memref<1x16xf32, #tpu.memory_space<vmem>>, %arg5: memref<1x4x2x16x16xf32, #tpu.memory_space<vmem>>) attributes {dimension_semantics = [#tpu.dimension_semantics<parallel>, #tpu.dimension_semantics<arbitrary>], iteration_bounds = array<i64: 2, 4>, scalar_prefetch = 0 : i64, scratch_operands = 0 : i64, tpu.core_type = #tpu.core_type<tc>, window_params = [{transform_indices = @transform_0, window_bounds = array<i64: 1, 18, 18, 4>}, {pipeline_mode = #tpu.pipeline_mode<synchronous>, transform_indices = @transform_1, window_bounds = array<i64: 4, 12, 16>}, {pipeline_mode = #tpu.pipeline_mode<synchronous>, transform_indices = @transform_2, window_bounds = array<i64: 1, 16>}, {transform_indices = @transform_3, window_bounds = array<i64: 1, 4, 2, 16, 16>}]} {
    %c4_i32 = arith.constant 4 : i32
    %0 = arith.muli %arg1, %c4_i32 : i32
    %1 = tpu.assume_multiple %0, 4 : i32
    %c0 = arith.constant 0 : index
    %2 = arith.index_cast %1 : i32 to index
    %c0_0 = arith.constant 0 : index
    %c0_1 = arith.constant 0 : index
    %3 = vector.load %arg2[%c0, %2, %c0_0, %c0_1] : memref<1x18x18x4xf32, #tpu.memory_space<vmem>>, vector<1x6x18x4xf32>
    %4 = vector.shape_cast %3 : vector<1x6x18x4xf32> to vector<6x18x4xf32>
    %5 = vector.extract_strided_slice %4 {offsets = [0, 0, 0], sizes = [6, 16, 4], strides = [1, 1, 1]} : vector<6x18x4xf32> to vector<6x16x4xf32>
    %6 = vector.extract_strided_slice %4 {offsets = [0, 1, 0], sizes = [6, 16, 4], strides = [1, 1, 1]} : vector<6x18x4xf32> to vector<6x16x4xf32>
    %7 = vector.extract_strided_slice %4 {offsets = [0, 2, 0], sizes = [6, 16, 4], strides = [1, 1, 1]} : vector<6x18x4xf32> to vector<6x16x4xf32>
    %8 = tpu.concatenate %5, %6, %7 in 2 : vector<6x16x4xf32>, vector<6x16x4xf32>, vector<6x16x4xf32> -> vector<6x16x12xf32>
    %c0_2 = arith.constant 0 : index
    %c0_3 = arith.constant 0 : index
    %9 = vector.load %arg4[%c0_2, %c0_3] : memref<1x16xf32, #tpu.memory_space<vmem>>, vector<1x16xf32>
    %10 = vector.shape_cast %9 : vector<1x16xf32> to vector<16xf32>
    %11 = vector.shape_cast %10 : vector<16xf32> to vector<1x16xf32>
    %12 = vector.broadcast %11 : vector<1x16xf32> to vector<64x16xf32>
    %13 = vector.extract_strided_slice %8 {offsets = [0, 0, 0], sizes = [4, 16, 12], strides = [1, 1, 1]} : vector<6x16x12xf32> to vector<4x16x12xf32>
    %14 = vector.shape_cast %13 : vector<4x16x12xf32> to vector<64x12xf32>
    %c0_4 = arith.constant 0 : index
    %c0_5 = arith.constant 0 : index
    %c0_6 = arith.constant 0 : index
    %15 = vector.load %arg3[%c0_4, %c0_5, %c0_6] : memref<4x12x16xf32, #tpu.memory_space<vmem>>, vector<1x12x16xf32>
    %16 = vector.shape_cast %15 : vector<1x12x16xf32> to vector<12x16xf32>
    %cst = arith.constant dense<0.000000e+00> : vector<64x16xf32>
    %17 = tpu.matmul %14, %16, %cst {dimension_numbers = #tpu.dot_dimension_numbers<[1], [0], [0], [1], [0, 0, 1, 1], [], []>} : vector<64x12xf32>, vector<12x16xf32>, vector<64x16xf32> -> vector<64x16xf32>
    %18 = arith.addf %12, %17 : vector<64x16xf32>
    %19 = vector.extract_strided_slice %8 {offsets = [1, 0, 0], sizes = [4, 16, 12], strides = [1, 1, 1]} : vector<6x16x12xf32> to vector<4x16x12xf32>
    %20 = vector.shape_cast %19 : vector<4x16x12xf32> to vector<64x12xf32>
    %c1 = arith.constant 1 : index
    %c0_7 = arith.constant 0 : index
    %c0_8 = arith.constant 0 : index
    %21 = vector.load %arg3[%c1, %c0_7, %c0_8] : memref<4x12x16xf32, #tpu.memory_space<vmem>>, vector<1x12x16xf32>
    %22 = vector.shape_cast %21 : vector<1x12x16xf32> to vector<12x16xf32>
    %cst_9 = arith.constant dense<0.000000e+00> : vector<64x16xf32>
    %23 = tpu.matmul %20, %22, %cst_9 {dimension_numbers = #tpu.dot_dimension_numbers<[1], [0], [0], [1], [0, 0, 1, 1], [], []>} : vector<64x12xf32>, vector<12x16xf32>, vector<64x16xf32> -> vector<64x16xf32>
    %24 = arith.addf %18, %23 : vector<64x16xf32>
    %25 = vector.shape_cast %24 : vector<64x16xf32> to vector<4x16x16xf32>
    %c0_10 = arith.constant 0 : index
    %c0_11 = arith.constant 0 : index
    %c0_12 = arith.constant 0 : index
    %c0_13 = arith.constant 0 : index
    %c0_14 = arith.constant 0 : index
    %26 = vector.load %arg5[%c0_10, %c0_11, %c0_12, %c0_13, %c0_14] : memref<1x4x2x16x16xf32, #tpu.memory_space<vmem>>, vector<1x4x1x16x16xf32>
    %27 = vector.shape_cast %26 : vector<1x4x1x16x16xf32> to vector<4x16x16xf32>
    %28 = vector.shape_cast %25 : vector<4x16x16xf32> to vector<1x4x1x16x16xf32>
    tpu.vector_store %arg5[%c0_10, %c0_11, %c0_12, %c0_13, %c0_14], %28 {strides = array<i32>} : memref<1x4x2x16x16xf32, #tpu.memory_space<vmem>>, vector<1x4x1x16x16xf32>,
    %29 = vector.extract_strided_slice %8 {offsets = [1, 0, 0], sizes = [4, 16, 12], strides = [1, 1, 1]} : vector<6x16x12xf32> to vector<4x16x12xf32>
    %30 = vector.shape_cast %29 : vector<4x16x12xf32> to vector<64x12xf32>
    %c2 = arith.constant 2 : index
    %c0_15 = arith.constant 0 : index
    %c0_16 = arith.constant 0 : index
    %31 = vector.load %arg3[%c2, %c0_15, %c0_16] : memref<4x12x16xf32, #tpu.memory_space<vmem>>, vector<1x12x16xf32>
    %32 = vector.shape_cast %31 : vector<1x12x16xf32> to vector<12x16xf32>
    %cst_17 = arith.constant dense<0.000000e+00> : vector<64x16xf32>
    %33 = tpu.matmul %30, %32, %cst_17 {dimension_numbers = #tpu.dot_dimension_numbers<[1], [0], [0], [1], [0, 0, 1, 1], [], []>} : vector<64x12xf32>, vector<12x16xf32>, vector<64x16xf32> -> vector<64x16xf32>
    %34 = arith.addf %12, %33 : vector<64x16xf32>
    %35 = vector.extract_strided_slice %8 {offsets = [2, 0, 0], sizes = [4, 16, 12], strides = [1, 1, 1]} : vector<6x16x12xf32> to vector<4x16x12xf32>
    %36 = vector.shape_cast %35 : vector<4x16x12xf32> to vector<64x12xf32>
    %c3 = arith.constant 3 : index
    %c0_18 = arith.constant 0 : index
    %c0_19 = arith.constant 0 : index
    %37 = vector.load %arg3[%c3, %c0_18, %c0_19] : memref<4x12x16xf32, #tpu.memory_space<vmem>>, vector<1x12x16xf32>
    %38 = vector.shape_cast %37 : vector<1x12x16xf32> to vector<12x16xf32>
    %cst_20 = arith.constant dense<0.000000e+00> : vector<64x16xf32>
    %39 = tpu.matmul %36, %38, %cst_20 {dimension_numbers = #tpu.dot_dimension_numbers<[1], [0], [0], [1], [0, 0, 1, 1], [], []>} : vector<64x12xf32>, vector<12x16xf32>, vector<64x16xf32> -> vector<64x16xf32>
    %40 = arith.addf %34, %39 : vector<64x16xf32>
    %41 = vector.shape_cast %40 : vector<64x16xf32> to vector<4x16x16xf32>
    %c0_21 = arith.constant 0 : index
    %c0_22 = arith.constant 0 : index
    %c1_23 = arith.constant 1 : index
    %c0_24 = arith.constant 0 : index
    %c0_25 = arith.constant 0 : index
    %42 = vector.load %arg5[%c0_21, %c0_22, %c1_23, %c0_24, %c0_25] : memref<1x4x2x16x16xf32, #tpu.memory_space<vmem>>, vector<1x4x1x16x16xf32>
    %43 = vector.shape_cast %42 : vector<1x4x1x16x16xf32> to vector<4x16x16xf32>
    %44 = vector.shape_cast %41 : vector<4x16x16xf32> to vector<1x4x1x16x16xf32>
    tpu.vector_store %arg5[%c0_21, %c0_22, %c1_23, %c0_24, %c0_25], %44 {strides = array<i32>} : memref<1x4x2x16x16xf32, #tpu.memory_space<vmem>>, vector<1x4x1x16x16xf32>,
    return
  }
  func.func @transform_0(%arg0: i32, %arg1: i32) -> (i32, i32, i32, i32) {
    %c0_i32 = arith.constant 0 : i32
    %c0_i32_0 = arith.constant 0 : i32
    %c0_i32_1 = arith.constant 0 : i32
    %c0_i32_2 = arith.constant 0 : i32
    return %arg0, %c0_i32, %c0_i32_0, %c0_i32_1 : i32, i32, i32, i32
  }
  func.func @transform_1(%arg0: i32, %arg1: i32) -> (i32, i32, i32) {
    %c0_i32 = arith.constant 0 : i32
    %c0_i32_0 = arith.constant 0 : i32
    %c0_i32_1 = arith.constant 0 : i32
    %c0_i32_2 = arith.constant 0 : i32
    return %c0_i32, %c0_i32_0, %c0_i32_1 : i32, i32, i32
  }
  func.func @transform_2(%arg0: i32, %arg1: i32) -> (i32, i32) {
    %c0_i32 = arith.constant 0 : i32
    %c0_i32_0 = arith.constant 0 : i32
    %c0_i32_1 = arith.constant 0 : i32
    return %c0_i32, %c0_i32_0 : i32, i32
  }
  func.func @transform_3(%arg0: i32, %arg1: i32) -> (i32, i32, i32, i32, i32) {
    %c0_i32 = arith.constant 0 : i32
    %c0_i32_0 = arith.constant 0 : i32
    %c0_i32_1 = arith.constant 0 : i32
    %c0_i32_2 = arith.constant 0 : i32
    return %arg0, %arg1, %c0_i32, %c0_i32_0, %c0_i32_1 : i32, i32, i32, i32, i32
  }
}

</mosaic_0001>

<bundles_post_ra>
// kernel: tpu_custom_call.1
= control target key start
LH: loop header
LB: loop body
LE: loop exit
PB: predicated region body
PF: predicated region fallthrough
CT: control target
= control target key end

     0   :  { %8 = vsyncpa [#allocation3], 0  ;;  %s1411_s0 = inlined_call_operand.vmem [shape: f32[2,18,18,4], index: 0, kind: input, shape index: {}]   ;;  %s1412_s1 = inlined_call_operand.vmem [shape: f32[4,12,16], index: 1, kind: input, shape index: {}]   ;;  %s1413_s2 = inlined_call_operand.vmem [shape: f32[1,16], index: 2, kind: input, shape index: {}]   ;;  %s1414_s3 = inlined_call_operand.hbm [shape: f32[2,16,2,16,16], index: 3, kind: output, shape index: {}]  }
   0x1   :  { %10 = vsyncpa [#allocation3 + $0x1], 0  ;;  %s1021_s12 = smov 0   ;;  %s1023_s13 = smov 0  }
   0x2   :  { %s1025_s14 = smov 0   ;;  %s1027_s15 = smov 0  }
   0x3   :  { %s1029_s16 = smov 0   ;;  %s1031_s17 = smov 0  }
   0x4   :  { %s1033_s18 = smov 0   ;;  %s1035_s19 = smov 0  }
   0x5 LB: > { %s759_s20 = sadd.s32 4294967295, %s996_s19   ;;  %s760_s21 = sadd.s32 4294967294, %s996_s19   ;;  %s996_s19 = sphi %s1035_s19, %s16_s19   ;;  %s992_s18 = sphi %s1033_s18, %s1423_s18   ;;  %s988_s17 = sphi %s1031_s17, %s1422_s17   ;;  %s984_s16 = sphi %s1029_s16, %s1421_s16   ;;  %s980_s15 = sphi %s1027_s15, %s1420_s15   ;;  %s976_s14 = sphi %s1025_s14, %s1419_s14   ;;  %s972_s13 = sphi %s1023_s13, %s1418_s13   ;;  %s968_s12 = sphi %s1021_s12, %s1417_s12  }
   0x6   : > { %s25_s22 = sadd.s32 1, %s988_s17  ;;  %s28_s23 = sadd.s32 1, %s992_s18 }
   0x7   : > { %p26_p0 = scmp.ge.s32.totalorder %s25_s22, 4  ;;  %p115_p1 = scmp.ne.s32.totalorder %s976_s14, %s972_s13 }
   0x8   : > { %p116_p2 = scmp.eq.s32.totalorder %s759_s20, 7  ;;  %p121_p5 = scmp.ne.s32.totalorder %s972_s13, %s968_s12 }
   0x9   : > { %s1425_s22 = smov (%p26_p0, %s25_s22), 0  ;;  %s1427_s23 = smov (!%p26_p0, %s28_s23), %s992_s18 }
   0xa   : > { %s101_s24 = ssub.s32 %s988_s17, %s1425_s22  ;;  %p1072_p3 = por %p116_p2, %p115_p1 }
   0xb   : > { %p30_p4 = scmp.ge.s32.totalorder %s1427_s23, 2  ;;  %p122_p6 = scmp.eq.s32.totalorder %s760_s21, 7 }
   0xc   : > { %p763_p7 = scmp.ge.s32.totalorder %s996_s19, 1  ;;  %p154_p9 = scmp.lt.s32.totalorder %s996_s19, 9 }
   0xd   : > { %s1429_s23 = smov (%p30_p4, %s1427_s23), 0  ;;  %p1081_p8 = por %p122_p6, %p121_p5 }
   0xe   : > { %s100_s27 = ssub.s32 %s992_s18, %s1429_s23  ;;  %s105_s28 = sadd.s32 1, %s976_s14 }
   0xf   : > { %s102_s29 = sor.u32 %s101_s24, %s100_s27  ;;  %p155_p10 = pnand %p763_p7, %p154_p9 }
  0x10   : > { %p103_p11 = scmp.eq.s32.totalorder %s102_s29, 0  ;;  %p178_p12 = scmp.lt.s32.totalorder (!%p155_p10), %s984_s16, 1 }
  0x11   : > { %158 = sbr.rel (%p155_p10) target bundleno = 361 (0x169), region = 32  ;;  %s998_s11 = smov (!%p155_p10), 4  }
  0x12   : > { %s1090_s30 = scalar_select %p103_p11, %s976_s14, %s105_s28  }
  0x13   : > { %s767_s5 = smul.u32 (!%p155_p10), 96, %s980_s15  ;;  %s999_s20 = smov (!%p155_p10), 8  }
  0x14   : > { %s825_s7 = sshll.u32 (!%p155_p10), %s980_s15, 4  ;;  %s821_s8 = sshll.u32 (!%p155_p10), %s984_s16, 6 }
  0x16   : > { %s179_s4 = scalar_select %p178_p12, %s984_s16, 1  ;;  %vm223_vm0 = vcmask 1046528   ;;  %vm290_vm1 = vcmask 1045504   ;;  %vm414_vm2 = vcmask 1043456   ;;  %vm357_vm3 = vcmask 31744  }
  0x17   : > { %vm370_vm4 = vcmask 64512   ;;  %vm389_vm5 = vcmask 97280   ;;  %vm528_vm6 = vcmask 130048  }
  0x18   : > { %s826_s6 = smul.u32 432, %s179_s4  ;;  %s175_s4 = sand.u32 1, %s972_s13  }
  0x19   : > { %s663_s27 = scalar_lea.sflag [#allocation3], %s175_s4 }
  0x1a   : > { %s182_s9 = scalar_lea.vmem %s1411_s0, %s826_s6 }
  0x1b   : > { %s1098_s10 = scalar_lea.vmem %s182_s9, %s767_s5  ;;  %s764_s5 = sshll.u32 %s175_s4, 7 }
  0x1c   : > { %v1101_v0 = vld [vmem:[%s1098_s10 + $0x30] sm:$0xff]  ;;  %v1104_v1 = vld [vmem:[%s1098_s10 + $0x38] sm:$0xff]  ;;  %v1112_v5 = vld [vmem:[%s1098_s10 + $0x20] sm:$0xff]  ;;  %s1315_s6 = scalar_lea.vmem [#allocation2], %s764_s5  ;;  %s675_s9 = sadd.s32 %s825_s7, %s821_s8 }
  0x1d   : > { %v1107_v2 = vld [vmem:[%s1098_s10 + $0x18] sm:$0xff]  ;;  %v234_v3 = vrot.slane %v1101_v0, 1  ;;  %v235_v4 = vrot.slane %v1104_v1, 1  ;;  %v1116_v7 = vld [vmem:[%s1098_s10] sm:$0xff]  ;;  %v230_v8 = vrot.slane %v1112_v5, 1  ;;  %v1121_v10 = vld [vmem:[%s1098_s10 + $0x8] sm:$0xff] }
  0x1e   : > { %v229_v6 = vrot.slane %v1107_v2, 1  ;;  %v224_v11 = vrot.slane %v1116_v7, 1  ;;  %v225_v13 = vrot.slane %v1121_v10, 1  ;;  %v301_v14 = vrot.slane %v1101_v0, 2  ;;  %v192_v23 = vld [vmem:[%s1098_s10 + $0x28] sm:$0x3] }
  0x1f   : > { %v236_v9 = vsel %vm223_vm0, %v234_v3, %v235_v4  ;;  %v302_v15 = vrot.slane %v1104_v1, 2  ;;  %v296_v16 = vrot.slane %v1107_v2, 2  ;;  %v297_v17 = vrot.slane %v1112_v5, 2  ;;  %v195_v27 = vld [vmem:[%s1098_s10 + $0x40] sm:$0x3]  ;;  %v1154_v38 = vld [vmem:[%s1098_s10 + $0x48] sm:$0xff] }
  0x20   : > { %262 = vrot.lane.b32.xlu1 %v236_v9, %s998_s11  ;;  %v231_v12 = vsel %vm223_vm0, %v229_v6, %v230_v8  ;;  %v226_v18 = vsel %vm223_vm0, %v224_v11, %v225_v13  ;;  %v291_v19 = vrot.slane %v1116_v7, 2  ;;  %v292_v20 = vrot.slane %v1121_v10, 2  ;;  %v189_v31 = vld [vmem:[%s1098_s10 + $0x10] sm:$0x3]  ;;  %v198_v45 = vld [vmem:[%s1098_s10 + $0x58] sm:$0x3] }
  0x21   : > { %258 = vrot.lane.b32.xlu0 %v231_v12, %s998_s11  ;;  %254 = vrot.lane.b32.xlu2 %v226_v18, %s998_s11  ;;  %v303_v21 = vsel %vm290_vm1, %v301_v14, %v302_v15  ;;  %v298_v22 = vsel %vm290_vm1, %v296_v16, %v297_v17  ;;  %v299_v25 = vrot.slane %v192_v23, 2  ;;  %v232_v26 = vrot.slane %v192_v23, 1  ;;  %v1157_v39 = vld [vmem:[%s1098_s10 + $0x50] sm:$0xff]  ;;  %v1171_v49 = vld [vmem:[%s1098_s10 + $0x60] sm:$0xff]  ;;  %s678_s21 = sshll.u32 %s1315_s6, 4  ;;  %s922_s8 = scalar_lea.hbm %s1414_s3, 1024  ;;  %s679_s21 = int_to_ptr.vmem [resolvable:$true] %s678_s21 }
  0x22   : > { %v293_v24 = vsel %vm290_vm1, %v291_v19, %v292_v20  ;;  %v237_v28 = vrot.slane %v195_v27, 1  ;;  %v227_v33 = vrot.slane %v189_v31, 1  ;;  %v304_v34 = vrot.slane %v195_v27, 2  ;;  %v1174_v50 = vld [vmem:[%s1098_s10 + $0x68] sm:$0xff]  ;;  %v201_v58 = vld [vmem:[%s1098_s10 + $0x70] sm:$0x3] }
  0x23   : > { %v300_v29 = vsel %vm290_vm1, %v297_v17, %v299_v25  ;;  %v233_v30 = vsel %vm223_vm0, %v230_v8, %v232_v26  ;;  %v294_v35 = vrot.slane %v189_v31, 2  ;;  %v306_v41 = vrot.slane %v1154_v38, 2  ;;  %v1191_v63 = vld [vmem:[%s1098_s10 + $0x78] sm:$0xff]  ;;  %v1197_v6 = vld [vmem:[%s1098_s10 + $0x80] sm:$0xff]  ;;  %v204_v9 = vld [vmem:[%s1098_s10 + $0x88] sm:$0x3] }
  0x24   : > { %v238_v32 = vsel %vm223_vm0, %v235_v4, %v237_v28  ;;  %v228_v36 = vsel %vm223_vm0, %v225_v13, %v227_v33  ;;  %v305_v37 = vsel %vm290_vm1, %v302_v15, %v304_v34  ;;  %v307_v42 = vrot.slane %v1157_v39, 2  ;;  %v789_v23 = vld [vmem:[%s1412_s1 + $0x28] sm:$0xf]  ;;  %v777_v25 = vld [vmem:[%s1412_s1 + $0x10] sm:$0xff]  ;;  %v788_v26 = vld [vmem:[%s1412_s1 + $0x20] sm:$0xff]  ;;  %s822_s10 = sshll.u32 %s675_s9, 3 }
  0x25   : > { %v295_v40 = vsel %vm290_vm1, %v292_v20, %v294_v35  ;;  %v239_v43 = vrot.slane %v1154_v38, 1  ;;  %v240_v44 = vrot.slane %v1157_v39, 1  ;;  %v242_v46 = vrot.slane %v198_v45, 1  ;;  %v388_v20 = vld [vmem:[%s1412_s1 + $0x8] sm:$0xf]  ;;  %790 = vmatpush.msk.msra.mxu2 %vm414_vm2, %v789_v23  ;;  %v799_v27 = vld [vmem:[%s1412_s1 + $0x30] sm:$0xff] }
  0x26   : > { %v308_v47 = vsel %vm290_vm1, %v306_v41, %v307_v42  ;;  %v244_v52 = vrot.slane %v1171_v49, 1  ;;  %v245_v53 = vrot.slane %v1174_v50, 1  ;;  %v309_v54 = vrot.slane %v198_v45, 2  ;;  %768 = vmatpush.msk.msra.mxu0 %vm414_vm2, %v388_v20 }
  0x27   : > { %v241_v48 = vsel %vm223_vm0, %v239_v43, %v240_v44  ;;  %v243_v51 = vsel %vm223_vm0, %v240_v44, %v242_v46  ;;  %v311_v55 = vrot.slane %v1171_v49, 2  ;;  %v312_v59 = vrot.slane %v1174_v50, 2  ;;  %558 = vmatpush.msra.mxu2 %v788_v26 }
  0x28   : > { %329 = vrot.lane.b32.xlu1 %v303_v21, %s999_s20  ;;  %v246_v56 = vsel %vm223_vm0, %v244_v52, %v245_v53  ;;  %v310_v57 = vsel %vm290_vm1, %v307_v42, %v309_v54  ;;  %v314_v61 = vrot.slane %v201_v58, 2  ;;  %v247_v62 = vrot.slane %v201_v58, 1  ;;  %v387_v21 = vld [vmem:[%s1412_s1] sm:$0xff] }
  0x29   : > { %325 = vrot.lane.b32.xlu0 %v298_v22, %s999_s20  ;;  %321 = vrot.lane.b32.xlu2 %v293_v24, %s999_s20  ;;  %v313_v60 = vsel %vm290_vm1, %v311_v55, %v312_v59  ;;  %v249_v3 = vrot.slane %v1191_v63, 1  ;;  %v250_v11 = vrot.slane %v1197_v6, 1  ;;  %v252_v13 = vrot.slane %v204_v9, 1  ;;  %v778_v22 = vld [vmem:[%s1412_s1 + $0x18] sm:$0xf] }
  0x2a   : > { %v315_v4 = vsel %vm290_vm1, %v312_v59, %v314_v61  ;;  %v248_v8 = vsel %vm223_vm0, %v245_v53, %v247_v62  ;;  %v316_v14 = vrot.slane %v1191_v63, 2  ;;  %v317_v15 = vrot.slane %v1197_v6, 2  ;;  %779 = vmatpush.msk.msra.mxu1 %vm414_vm2, %v778_v22  ;;  %v800_v24 = vld [vmem:[%s1412_s1 + $0x38] sm:$0xf]  ;;  %433 = vmatpush.msra.mxu0 %v387_v21 }
  0x2b   : > { %v251_v12 = vsel %vm223_vm0, %v249_v3, %v250_v11  ;;  %v319_v16 = vrot.slane %v204_v9, 2  ;;  %v253_v17 = vsel %vm223_vm0, %v250_v11, %v252_v13  ;;  %801 = vmatpush.msk.msra.mxu3 %vm414_vm2, %v800_v24 }
  0x2c   : > { %v318_v18 = vsel %vm290_vm1, %v316_v14, %v317_v15  ;;  %494 = vmatpush.msra.mxu1 %v777_v25 }
  0x2d   : > { %v320_v19 = vsel %vm290_vm1, %v317_v15, %v319_v16  ;;  %619 = vmatpush.msra.mxu3 %v799_v27 }
  0x30   : > { %327 = vrot.lane.b32.xlu1 %v300_v29, %s999_s20 }
  0x31   : > { %260 = vrot.lane.b32.xlu0 %v233_v30, %s998_s11  ;;  %264 = vrot.lane.b32.xlu2 %v238_v32, %s998_s11 }
  0x38   : > { %256 = vrot.lane.b32.xlu1 %v228_v36, %s998_s11 }
  0x39   : > { %331 = vrot.lane.b32.xlu0 %v305_v37, %s999_s20  ;;  %323 = vrot.lane.b32.xlu2 %v295_v40, %s999_s20 }
  0x40   : > { %333 = vrot.lane.b32.xlu1 %v308_v47, %s999_s20 }
  0x41   : > { %266 = vrot.lane.b32.xlu0 %v241_v48, %s998_s11  ;;  %268 = vrot.lane.b32.xlu2 %v243_v51, %s998_s11 }
  0x48   : > { %270 = vrot.lane.b32.xlu1 %v246_v56, %s998_s11 }
  0x49   : > { %335 = vrot.lane.b32.xlu0 %v310_v57, %s999_s20  ;;  %337 = vrot.lane.b32.xlu2 %v313_v60, %s999_s20 }
  0x50   : > { %339 = vrot.lane.b32.xlu1 %v315_v4, %s999_s20 }
  0x51   : > { %272 = vrot.lane.b32.xlu0 %v248_v8, %s998_s11  ;;  %274 = vrot.lane.b32.xlu2 %v251_v12, %s998_s11 }
  0x58   : > { %276 = vrot.lane.b32.xlu1 %v253_v17, %s998_s11  ;;  %s677_s11 = scalar_lea.hbm %s1414_s3, %s822_s10 }
  0x59   : > { %341 = vrot.lane.b32.xlu0 %v318_v18, %s999_s20  ;;  %343 = vrot.lane.b32.xlu2 %v320_v19, %s999_s20  ;;  %s680_s24 = sshll.u32 %s677_s11, 4  ;;  %s681_s24 = int_to_ptr.hbm [resolvable:$true] %s680_s24 }
  0x5a   : > { %s916_s28 = sshra.s32 %s681_s24, 4  ;;  %s917_s28 = int_to_ptr.hbm [resolvable:$true] %s916_s28 }
  0x5b   : > { %s918_s29 = scalar_lea.hbm %s917_s28, 128  ;;  %p923_p2 = scmp.lt.s32.totalorder %s917_s28, %s1414_s3 }
  0x5c   : > { %p919_p13 = scmp.ne.s32.totalorder %s917_s28, %s918_s29  ;;  %p924_p4 = scmp.lt.s32.totalorder %s922_s8, %s918_s29 }
  0x5e   : > { %p920_p0 = pnand %p919_p13, %p1072_p3  ;;  %p925_p5 = por %p924_p4, %p923_p2 }
  0x60   : > { %p921_p1 = pneg %p920_p0 }
  0x62   : > { %p926_p6 = pnand %p925_p5, %p921_p1 }
  0x7b   : > { %v255_v28 = vpop.permute.xlu2 %254 }
  0x7c   : > { %v358_v29 = vsel %vm357_vm3, %v1116_v7, %v255_v28 }
  0x83   : > { %v322_v30 = vpop.permute.xlu2 %321 }
  0x84   : > { %v371_v31 = vsel %vm370_vm4, %v358_v29, %v322_v30 }
  0x85   : > { %769 = vmatmul.msk.f32.vlgmr.msra.gmra.mxu0 %vm389_vm5, %v371_v31 }
  0x8b   : > { %v265_v41 = vpop.permute.xlu2 %264 }
  0x8c   : > { %v363_v46 = vsel %vm357_vm3, %v1104_v1, %v265_v41 }
  0x92   : > { %v263_v32 = vpop.permute.xlu1 %262 }
  0x93   : > { %v259_v33 = vpop.permute.xlu0 %258  ;;  %v362_v34 = vsel %vm357_vm3, %v1101_v0, %v263_v32 }
  0x94   : > { %v360_v36 = vsel %vm357_vm3, %v1107_v2, %v259_v33  ;;  %v324_v2 = vpop.permute.xlu2 %323 }
  0x9a   : > { %v330_v35 = vpop.permute.xlu1 %329 }
  0x9b   : > { %v375_v37 = vsel %vm370_vm4, %v362_v34, %v330_v35  ;;  %v326_v40 = vpop.permute.xlu0 %325 }
  0x9c   : > { %v373_v7 = vsel %vm370_vm4, %v360_v36, %v326_v40  ;;  %802 = vmatmul.msk.f32.vlgmr.msra.gmra.mxu3 %vm389_vm5, %v375_v37 }
  0x9d   : > { %780 = vmatmul.msk.f32.vlgmr.msra.gmra.mxu1 %vm389_vm5, %v373_v7  ;;  %791 = vmatmul.msk.f32.vlgmr.msra.gmra.mxu2 %vm389_vm5, %v373_v7 }
  0xa2   : > { %v328_v42 = vpop.permute.xlu1 %327 }
  0xa3   : > { %v261_v43 = vpop.permute.xlu0 %260 }
  0xa4   : > { %v361_v0 = vsel %vm357_vm3, %v1112_v5, %v261_v43 }
  0xa5   : > { %v374_v44 = vsel %vm370_vm4, %v361_v0, %v328_v42 }
  0xa6   : > { %781 = vmatmul.msk.f32.gmra.mxu1 %vm389_vm5, %v374_v44  ;;  %792 = vmatmul.msk.f32.gmra.mxu2 %vm389_vm5, %v374_v44 }
  0xaa   : > { %v257_v45 = vpop.permute.xlu1 %256 }
  0xab   : > { %v332_v47 = vpop.permute.xlu0 %331  ;;  %v359_v48 = vsel %vm357_vm3, %v1121_v10, %v257_v45  ;;  %v269_v10 = vpop.permute.xlu2 %268 }
  0xac   : > { %v376_v51 = vsel %vm370_vm4, %v363_v46, %v332_v47  ;;  %v372_v52 = vsel %vm370_vm4, %v359_v48, %v324_v2  ;;  %v365_v55 = vsel %vm357_vm3, %v1157_v39, %v269_v10 }
  0xad   : > { %803 = vmatmul.msk.f32.gmra.mxu3 %vm389_vm5, %v376_v51  ;;  %770 = vmatmul.msk.f32.gmra.mxu0 %vm389_vm5, %v372_v52 }
  0xae   : > { %782 = vmatmul.msk.f32.gmra.mxu1 %vm389_vm5, %v375_v37  ;;  %793 = vmatmul.msk.f32.gmra.mxu2 %vm389_vm5, %v375_v37 }
  0xb2   : > { %v334_v5 = vpop.permute.xlu1 %333 }
  0xb3   : > { %v267_v53 = vpop.permute.xlu0 %266  ;;  %v338_v59 = vpop.permute.xlu2 %337 }
  0xb4   : > { %v364_v1 = vsel %vm357_vm3, %v1154_v38, %v267_v53 }
  0xb5   : > { %v377_v54 = vsel %vm370_vm4, %v364_v1, %v334_v5  ;;  %771 = vmatmul.msk.f32.gmra.mxu0 %vm389_vm5, %v373_v7 }
  0xb6   : > { %783 = vmatmul.msk.f32.gmra.mxu1 %vm389_vm5, %v376_v51  ;;  %794 = vmatmul.msk.f32.gmra.mxu2 %vm389_vm5, %v376_v51 }
  0xb7   : > { %804 = vmatmul.msk.f32.gmra.mxu3 %vm389_vm5, %v377_v54 }
  0xba   : > { %v271_v38 = vpop.permute.xlu1 %270 }
  0xbb   : > { %v336_v56 = vpop.permute.xlu0 %335  ;;  %v366_v58 = vsel %vm357_vm3, %v1171_v49, %v271_v38  ;;  %v275_v49 = vpop.permute.xlu2 %274 }
  0xbc   : > { %v378_v57 = vsel %vm370_vm4, %v365_v55, %v336_v56  ;;  %v379_v60 = vsel %vm370_vm4, %v366_v58, %v338_v59  ;;  %v368_v4 = vsel %vm357_vm3, %v1191_v63, %v275_v49  ;;  %v1309_v63 = vld [vmem:[%s1413_s2] ss:$0 sm:$0xff] }
  0xbd   : > { %772 = vmatmul.msk.f32.gmra.mxu0 %vm389_vm5, %v374_v44 }
  0xbe   : > { %784 = vmatmul.msk.f32.gmra.mxu1 %vm389_vm5, %v377_v54  ;;  %795 = vmatmul.msk.f32.gmra.mxu2 %vm389_vm5, %v377_v54 }
  0xbf   : > { %805 = vmatmul.msk.f32.gmra.mxu3 %vm389_vm5, %v378_v57 }
  0xc2   : > { %v340_v62 = vpop.permute.xlu1 %339 }
  0xc3   : > { %v273_v39 = vpop.permute.xlu0 %272  ;;  %v344_v12 = vpop.permute.xlu2 %343 }
  0xc4   : > { %v367_v61 = vsel %vm357_vm3, %v1174_v50, %v273_v39 }
  0xc5   : > { %773 = vmatmul.msk.f32.gmra.mxu0 %vm389_vm5, %v375_v37  ;;  %v380_v3 = vsel %vm370_vm4, %v367_v61, %v340_v62 }
  0xc6   : > { %785 = vmatmul.msk.f32.gmra.mxu1 %vm389_vm5, %v378_v57  ;;  %796 = vmatmul.msk.f32.gmra.mxu2 %vm389_vm5, %v378_v57 }
  0xc7   : > { %806 = vmatmul.msk.f32.gmra.mxu3 %vm389_vm5, %v379_v60 }
  0xca   : > { %v277_v9 = vpop.permute.xlu1 %276 }
  0xcb   : > { %v342_v8 = vpop.permute.xlu0 %341  ;;  %v369_v11 = vsel %vm357_vm3, %v1197_v6, %v277_v9 }
  0xcc   : > { %v381_v50 = vsel %vm370_vm4, %v368_v4, %v342_v8  ;;  %v382_v13 = vsel %vm370_vm4, %v369_v11, %v344_v12 }
  0xcd   : > { %774 = vmatmul.msk.f32.gmra.mxu0 %vm389_vm5, %v376_v51 }
  0xce   : > { %786 = vmatmul.msk.f32.gmra.mxu1 %vm389_vm5, %v379_v60  ;;  %797 = vmatmul.msk.f32.gmra.mxu2 %vm389_vm5, %v379_v60 }
  0xcf   : > { %807 = vmatmul.msk.f32.gmra.mxu3 %vm389_vm5, %v380_v3 }
  0xd5   : > { %775 = vmatmul.msk.f32.gmra.mxu0 %vm389_vm5, %v377_v54 }
  0xd6   : > { %787 = vmatmul.msk.f32.gmra.mxu1 %vm389_vm5, %v380_v3  ;;  %798 = vmatmul.msk.f32.gmra.mxu2 %vm389_vm5, %v380_v3 }
  0xd7   : > { %808 = vmatmul.msk.f32.gmra.mxu3 %vm389_vm5, %v381_v50 }
  0xdd   : > { %776 = vmatmul.msk.f32.gmra.mxu0 %vm389_vm5, %v378_v57 }
  0xdf   : > { %809 = vmatmul.msk.f32.gmra.mxu3 %vm389_vm5, %v382_v13 }
 0x102   : > { %v435_v14 = vpop.f32.mrf.mxu0 }
 0x103   : > { %v459_v15 = vadd.f32 %v1309_v63, %v435_v14 }
 0x11a   : > { %v496_v16 = vpop.f32.mrf.mxu1 }
 0x11b   : > { %v520_v6 = vadd.f32 %v496_v16, %v459_v15 }
 0x11d   : > { %529 = vst.msk [vmem:[%s1315_s6] sm:$0xff] %vm528_vm6, %v520_v6 }
 0x11f   : > { %v621_v19 = vpop.f32.mrf.mxu3 }
 0x120   : > { %v560_v17 = vpop.f32.mrf.mxu2 }
 0x121   : > { %v584_v18 = vadd.f32 %v1309_v63, %v560_v17 }
 0x123   : > { %v645_v20 = vadd.f32 %v621_v19, %v584_v18  ;;  %v499_v21 = vpop.f32.mrf.mxu1 }
 0x125   : > { %810 = vst.msk [vmem:[%s1315_s6 + $0x10] sm:$0xff] %vm528_vm6, %v645_v20 }
 0x129   : > { %v563_v22 = vpop.f32.mrf.mxu2 }
 0x12a   : > { %v438_v23 = vpop.f32.mrf.mxu0  ;;  %v585_v27 = vadd.f32 %v1309_v63, %v563_v22 }
 0x12b   : > { %v460_v24 = vadd.f32 %v1309_v63, %v438_v23  ;;  %v502_v25 = vpop.f32.mrf.mxu1 }
 0x12d   : > { %v521_v26 = vadd.f32 %v499_v21, %v460_v24 }
 0x12f   : > { %530 = vst.msk [vmem:[%s1315_s6 + $0x8] sm:$0xff] %vm528_vm6, %v521_v26 }
 0x130   : > { %v624_v28 = vpop.f32.mrf.mxu3 }
 0x131   : > { %v646_v29 = vadd.f32 %v624_v28, %v585_v27  ;;  %v566_v30 = vpop.f32.mrf.mxu2 }
 0x132   : > { %v441_v31 = vpop.f32.mrf.mxu0  ;;  %v586_v35 = vadd.f32 %v1309_v63, %v566_v30 }
 0x133   : > { %811 = vst.msk [vmem:[%s1315_s6 + $0x18] sm:$0xff] %vm528_vm6, %v646_v29  ;;  %v461_v32 = vadd.f32 %v1309_v63, %v441_v31  ;;  %v505_v33 = vpop.f32.mrf.mxu1 }
 0x135   : > { %v522_v34 = vadd.f32 %v502_v25, %v461_v32 }
 0x137   : > { %531 = vst.msk [vmem:[%s1315_s6 + $0x20] sm:$0xff] %vm528_vm6, %v522_v34 }
 0x139   : > { %v569_v36 = vpop.f32.mrf.mxu2 }
 0x13a   : > { %v627_v37 = vpop.f32.mrf.mxu3  ;;  %v444_v40 = vpop.f32.mrf.mxu0  ;;  %v587_v0 = vadd.f32 %v1309_v63, %v569_v36 }
 0x13b   : > { %v647_v7 = vadd.f32 %v627_v37, %v586_v35  ;;  %v462_v41 = vadd.f32 %v1309_v63, %v444_v40  ;;  %v508_v43 = vpop.f32.mrf.mxu1 }
 0x13d   : > { %812 = vst.msk [vmem:[%s1315_s6 + $0x30] sm:$0xff] %vm528_vm6, %v647_v7  ;;  %v523_v42 = vadd.f32 %v505_v33, %v462_v41 }
 0x13f   : > { %532 = vst.msk [vmem:[%s1315_s6 + $0x28] sm:$0xff] %vm528_vm6, %v523_v42 }
 0x141   : > { %v572_v44 = vpop.f32.mrf.mxu2 }
 0x142   : > { %v630_v2 = vpop.f32.mrf.mxu3  ;;  %v447_v45 = vpop.f32.mrf.mxu0  ;;  %v588_v52 = vadd.f32 %v1309_v63, %v572_v44 }
 0x143   : > { %v648_v46 = vadd.f32 %v630_v2, %v587_v0  ;;  %v463_v47 = vadd.f32 %v1309_v63, %v447_v45  ;;  %v511_v51 = vpop.f32.mrf.mxu1 }
 0x145   : > { %813 = vst.msk [vmem:[%s1315_s6 + $0x38] sm:$0xff] %vm528_vm6, %v648_v46  ;;  %v524_v48 = vadd.f32 %v508_v43, %v463_v47 }
 0x147   : > { %533 = vst.msk [vmem:[%s1315_s6 + $0x40] sm:$0xff] %vm528_vm6, %v524_v48 }
 0x149   : > { %v575_v5 = vpop.f32.mrf.mxu2 }
 0x14a   : > { %v633_v53 = vpop.f32.mrf.mxu3  ;;  %v450_v1 = vpop.f32.mrf.mxu0  ;;  %v589_v56 = vadd.f32 %v1309_v63, %v575_v5 }
 0x14b   : > { %v649_v54 = vadd.f32 %v633_v53, %v588_v52  ;;  %v464_v10 = vadd.f32 %v1309_v63, %v450_v1  ;;  %v514_v57 = vpop.f32.mrf.mxu1 }
 0x14d   : > { %814 = vst.msk [vmem:[%s1315_s6 + $0x50] sm:$0xff] %vm528_vm6, %v649_v54  ;;  %v525_v55 = vadd.f32 %v511_v51, %v464_v10 }
 0x14f   : > { %534 = vst.msk [vmem:[%s1315_s6 + $0x48] sm:$0xff] %vm528_vm6, %v525_v55 }
 0x151   : > { %v578_v39 = vpop.f32.mrf.mxu2 }
 0x152   : > { %v636_v38 = vpop.f32.mrf.mxu3  ;;  %v453_v58 = vpop.f32.mrf.mxu0  ;;  %v590_v62 = vadd.f32 %v1309_v63, %v578_v39 }
 0x153   : > { %v650_v59 = vadd.f32 %v636_v38, %v589_v56  ;;  %v465_v60 = vadd.f32 %v1309_v63, %v453_v58  ;;  %v517_v50 = vpop.f32.mrf.mxu1 }
 0x155   : > { %815 = vst.msk [vmem:[%s1315_s6 + $0x58] sm:$0xff] %vm528_vm6, %v650_v59  ;;  %v526_v61 = vadd.f32 %v514_v57, %v465_v60 }
 0x157   : > { %535 = vst.msk [vmem:[%s1315_s6 + $0x60] sm:$0xff] %vm528_vm6, %v526_v61 }
 0x159   : > { %v581_v11 = vpop.f32.mrf.mxu2 }
 0x15a   : > { %v639_v3 = vpop.f32.mrf.mxu3  ;;  %v456_v49 = vpop.f32.mrf.mxu0  ;;  %v591_v12 = vadd.f32 %v1309_v63, %v581_v11 }
 0x15b   : > { %v651_v4 = vadd.f32 %v639_v3, %v590_v62  ;;  %v466_v8 = vadd.f32 %v1309_v63, %v456_v49 }
 0x15d   : > { %816 = vst.msk [vmem:[%s1315_s6 + $0x70] sm:$0xff] %vm528_vm6, %v651_v4  ;;  %v527_v9 = vadd.f32 %v517_v50, %v466_v8 }
 0x15f   : > { %536 = vst.msk [vmem:[%s1315_s6 + $0x68] sm:$0xff] %vm528_vm6, %v527_v9 }
 0x162   : > { %v642_v13 = vpop.f32.mrf.mxu3 }
 0x163   : > { %v652_v14 = vadd.f32 %v642_v13, %v591_v12 }
 0x165   : > { %817 = vst.msk [vmem:[%s1315_s6 + $0x78] sm:$0xff] %vm528_vm6, %v652_v14 }
 0x166   : > { %929 = shalt.err (!%p926_p6)
}
 0x167   : > { %s1000_s4 = smov 128  }
 0x168   : > { %827 = dma.vmem_to_hbm [thread:$0]  (%p1072_p3), %s679_s21, 2048, %s681_s24, %s663_s27, %s1000_s4, %s1000_s4, %s999_s20  }
 0x169 PF: > { %p833_p7 = scmp.ge.s32.totalorder %s996_s19, 2  ;;  %s695_s6 = sand.u32 1, %s968_s12  }
 0x16a   : > { %s696_s15 = scalar_lea.sflag [#allocation3], %s695_s6 }
 0x16b   : > { %p830_p9 = pnand %p833_p7, %p1081_p8 }
 0x16d   : > { %p831_p10 = pneg %p830_p9 }
 0x16f   : > { %963 = dma.done.wait (%p831_p10), %s696_s15, 2048  }
 0x170   : > { %965 = vsyncadd (%p831_p10), %s696_s15, 4294965248  ;;  %s16_s19 = sadd.s32 1, %s996_s19   ;;  %s1417_s12 = smov %s972_s13 }
 0x171   : > { %p13_p11 = scmp.ge.s32.totalorder %s16_s19, 10   ;;  %s1418_s13 = smov %s976_s14 }
 0x172   : > { %s1419_s14 = smov %s1090_s30  ;;  %s1420_s15 = smov %s988_s17 }
 0x173   : > { %s1421_s16 = smov %s992_s18  ;;  %s1422_s17 = smov %s1425_s22 }
 0x174   : > { %s1423_s18 = smov %s1429_s23  ;;  %15 = sbr.rel (!%p13_p11) target bundleno = 5 (0x5), region = 72 }
 0x179   :  { %702 = vsyncpa [#allocation3], 1 }
 0x17a   :  { %704 = vsyncpa [#allocation3 + $0x1], 1 }

</bundles_post_ra>
